<compile_context>
chip_gen: v5e
topology: v5e:2x2
jax: 0.10.0
libtpu: 0.0.40
codegen_flags: <defaults>
</compile_context>

<pallas_src>
import functools

import jax
import jax.numpy as jnp
from jax.experimental import pallas as pl
from jax.experimental.pallas import tpu as pltpu

_LANES = 128
_SUBLANES = 8


def _round_up(x, m):
    return ((x + m - 1) // m) * m


def _round_down(x, m):
    return (x // m) * m


def _charbonnier_partial_kernel(pred_ref, targ_ref, out_ref, *, eps,
                                block_rows, rows):
    """Writes per-block partial sums of sqrt((t - p)^2 + eps^2) as (8,128) tiles."""
    i = pl.program_id(0)

    diff = targ_ref[...].astype(jnp.float32) - pred_ref[...].astype(jnp.float32)
    val = jnp.sqrt(diff * diff + jnp.float32(eps) * jnp.float32(eps))

    def write(v):
        # (block_rows, 128) -> (block_rows//8, 8, 128); reducing the leading
        # axis is vreg-wise VPU adds only (no XLU work per step).
        out_ref[0] = jnp.sum(
            v.reshape(block_rows // _SUBLANES, _SUBLANES, _LANES), axis=0)

    ragged = (rows % block_rows) != 0  # static Python bool
    if not ragged:
        write(val)
    else:
        is_last = i == pl.num_programs(0) - 1

        @pl.when(jnp.logical_not(is_last))
        def _():
            write(val)

        @pl.when(is_last)
        def _():
            # Rows past `rows` in the boundary block hold undefined data; zero
            # them before summing. Only the last block pays this cost.
            rows_valid = rows - i * block_rows
            row_idx = jax.lax.broadcasted_iota(jnp.int32, val.shape, 0)
            write(jnp.where(row_idx < rows_valid, val, 0.0))


def charbonnier_loss(pred, target, loss_weight=1.0, eps=1e-3, block_rows=None):
    """Pallas TPU implementation of CharbonnierLoss (reduction='mean')."""
    assert pred.shape == target.shape, (pred.shape, target.shape)
    n_total = pred.size
    assert n_total > 0

    itemsize = jnp.dtype(pred.dtype).itemsize
    # Native sublane tile: 8 rows for 32-bit, 16 for 16-bit, 32 for 8-bit dtypes.
    min_rows = {4: _SUBLANES, 2: 2 * _SUBLANES}.get(itemsize, 4 * _SUBLANES)

    eps_f32 = jnp.float32(eps)
    flat_pred = jnp.reshape(pred, (-1,))
    flat_targ = jnp.reshape(target, (-1,))

    rows = n_total // _LANES          # 128-aligned prefix rows for the kernel
    aligned = rows * _LANES
    tail = n_total - aligned          # < 128 leftover elements (plain JAX)

    def tail_sum():
        pt = flat_pred[aligned:].astype(jnp.float32)
        tt = flat_targ[aligned:].astype(jnp.float32)
        return jnp.sum(jnp.sqrt(jnp.square(tt - pt) + eps_f32 * eps_f32))

    if rows == 0:
        # Fewer than 128 elements total: nothing worth a kernel launch.
        return tail_sum() * jnp.float32(loss_weight / n_total)

    pred2d = jnp.reshape(flat_pred[:aligned], (rows, _LANES))
    targ2d = jnp.reshape(flat_targ[:aligned], (rows, _LANES))

    # ---- choose the row tile (sweepable via `block_rows`) ----
    if block_rows is None:
        # ~4 MiB of input per pipeline buffer (8192 rows f32, 16384 rows bf16).
        block_rows = (4 << 20) // (_LANES * itemsize)
    # Keep double-buffered inputs (2 inputs x 2 buffers) under ~24 MiB so we
    # stay well inside v7x's 64 MiB physical VMEM and the raised scoped limit.
    vmem_cap_rows = (24 << 20) // (4 * _LANES * itemsize)
    block_rows = min(int(block_rows), vmem_cap_rows, _round_up(rows, min_rows))
    block_rows = max(_round_down(block_rows, min_rows), min_rows)
    nblk = pl.cdiv(rows, block_rows)
    # Prefer >= 2 grid steps so a v7x megacore ("parallel" axis) keeps both
    # TensorCores busy on mid-size inputs.
    if nblk == 1 and rows > 2 * min_rows:
        block_rows = max(_round_up(pl.cdiv(rows, 2), min_rows), min_rows)
        nblk = pl.cdiv(rows, block_rows)

    kernel = functools.partial(
        _charbonnier_partial_kernel,
        eps=float(eps), block_rows=block_rows, rows=rows)

    cost = pl.CostEstimate(
        flops=4 * aligned,
        transcendentals=aligned,
        bytes_accessed=2 * aligned * itemsize + nblk * _SUBLANES * _LANES * 4)

    partials = pl.pallas_call(
        kernel,
        out_shape=jax.ShapeDtypeStruct((nblk, _SUBLANES, _LANES), jnp.float32),
        grid_spec=pltpu.PrefetchScalarGridSpec(
            num_scalar_prefetch=0,
            grid=(nblk,),
            in_specs=[
                pl.BlockSpec((block_rows, _LANES), lambda i: (i, 0)),
                pl.BlockSpec((block_rows, _LANES), lambda i: (i, 0)),
            ],
            out_specs=pl.BlockSpec((1, _SUBLANES, _LANES), lambda i: (i, 0, 0)),
        ),
        compiler_params=pltpu.CompilerParams(
            # TODO(synk): on v7x, verify in a profile that this shards across
            # both TensorCores; switch to pltpu.CORE_PARALLEL if one TC idles.
            dimension_semantics=("parallel",),
            # Explicit limit: v5e's scoped default is only 16 MiB.
            vmem_limit_bytes=32 << 20,
        ),
        cost_estimate=cost,
    )(pred2d, targ2d)

    total = jnp.sum(partials)
    if tail:
        total = total + tail_sum()
    return total * jnp.float32(loss_weight / n_total)


if __name__ == "__main__":
    def ref_loss(pred, target, loss_weight=1.0, eps=1e-3):
        p = pred.astype(jnp.float32)
        t = target.astype(jnp.float32)
        return loss_weight * jnp.mean(jnp.sqrt(jnp.square(t - p) + eps * eps))

    key = jax.random.PRNGKey(0)
    k1, k2, k3, k4 = jax.random.split(key, 4)

    # Case 1: NCHW f32 inputs matching the PyTorch module (numel % 128 == 0).
    pred = jax.random.normal(k1, (2, 4, 16, 16), dtype=jnp.float32)
    target = jax.random.normal(k2, (2, 4, 16, 16), dtype=jnp.float32)
    out = jax.block_until_ready(charbonnier_loss(pred, target, loss_weight=1.0))
    ref = jax.block_until_ready(ref_loss(pred, target, loss_weight=1.0))
    assert jnp.allclose(out, ref, rtol=1e-5, atol=1e-6), (out, ref)

    # Case 2: odd shape — 128-aligned prefix in the kernel, <128-elem tail in JAX.
    pred = jax.random.normal(k3, (3, 3, 17, 19), dtype=jnp.float32)
    target = jax.random.normal(k4, (3, 3, 17, 19), dtype=jnp.float32)
    out = jax.block_until_ready(charbonnier_loss(pred, target, loss_weight=0.5))
    ref = jax.block_until_ready(ref_loss(pred, target, loss_weight=0.5))
    assert jnp.allclose(out, ref, rtol=1e-5, atol=1e-6), (out, ref)

    # Case 3: bf16 inputs (sub-32-bit path: 16-row-aligned blocks, in-kernel upcast).
    pred = jax.random.normal(k1, (2, 4, 16, 16), dtype=jnp.bfloat16)
    target = jax.random.normal(k2, (2, 4, 16, 16), dtype=jnp.bfloat16)
    out = jax.block_until_ready(charbonnier_loss(pred, target, loss_weight=1.0))
    ref = jax.block_until_ready(ref_loss(pred, target, loss_weight=1.0))
    assert jnp.allclose(out, ref, rtol=1e-4, atol=1e-5), (out, ref)

    print("KERNEL_OK")
</pallas_src>

<mosaic_0001>
module attributes {stable_mosaic.version = 11 : i64} {
  func.func @_charbonnier_partial_kernel(%arg0: i32, %arg1: memref<16x128xf32, #tpu.memory_space<vmem>>, %arg2: memref<16x128xf32, #tpu.memory_space<vmem>>, %arg3: memref<1x8x128xf32, #tpu.memory_space<vmem>>) attributes {dimension_semantics = [#tpu.dimension_semantics<parallel>], iteration_bounds = array<i64: 1>, scalar_prefetch = 0 : i64, scratch_operands = 0 : i64, tpu.core_type = #tpu.core_type<tc>, window_params = [{transform_indices = @transform_0, window_bounds = array<i64: 16, 128>}, {transform_indices = @transform_1, window_bounds = array<i64: 16, 128>}, {transform_indices = @transform_2, window_bounds = array<i64: 1, 8, 128>}]} {
    %c0 = arith.constant 0 : index
    %c0_0 = arith.constant 0 : index
    %0 = vector.load %arg2[%c0, %c0_0] : memref<16x128xf32, #tpu.memory_space<vmem>>, vector<16x128xf32>
    %c0_1 = arith.constant 0 : index
    %c0_2 = arith.constant 0 : index
    %1 = vector.load %arg1[%c0_1, %c0_2] : memref<16x128xf32, #tpu.memory_space<vmem>>, vector<16x128xf32>
    %2 = arith.subf %0, %1 : vector<16x128xf32>
    %3 = arith.mulf %2, %2 : vector<16x128xf32>
    %cst = arith.constant 1.000000e-03 : f32
    %cst_3 = arith.constant 1.000000e-03 : f32
    %4 = arith.mulf %cst, %cst_3 : f32
    %5 = vector.broadcast %4 : f32 to vector<16x128xf32>
    %6 = arith.addf %3, %5 : vector<16x128xf32>
    %7 = math.sqrt %6 : vector<16x128xf32>
    %8 = vector.shape_cast %7 : vector<16x128xf32> to vector<2x8x128xf32>
    %cst_4 = arith.constant dense<0.000000e+00> : vector<8x128xf32>
    %9 = vector.multi_reduction <add>, %8, %cst_4 [0] : vector<2x8x128xf32> to vector<8x128xf32>
    %c0_5 = arith.constant 0 : index
    %c0_6 = arith.constant 0 : index
    %c0_7 = arith.constant 0 : index
    %10 = vector.load %arg3[%c0_5, %c0_6, %c0_7] : memref<1x8x128xf32, #tpu.memory_space<vmem>>, vector<1x8x128xf32>
    %11 = vector.shape_cast %10 : vector<1x8x128xf32> to vector<8x128xf32>
    %12 = vector.shape_cast %9 : vector<8x128xf32> to vector<1x8x128xf32>
    tpu.vector_store %arg3[%c0_5, %c0_6, %c0_7], %12 {strides = array<i32>} : memref<1x8x128xf32, #tpu.memory_space<vmem>>, vector<1x8x128xf32>,
    return
  }
  func.func @transform_0(%arg0: i32) -> (i32, i32) {
    %c0_i32 = arith.constant 0 : i32
    %c0_i32_0 = arith.constant 0 : i32
    return %arg0, %c0_i32 : i32, i32
  }
  func.func @transform_1(%arg0: i32) -> (i32, i32) {
    %c0_i32 = arith.constant 0 : i32
    %c0_i32_0 = arith.constant 0 : i32
    return %arg0, %c0_i32 : i32, i32
  }
  func.func @transform_2(%arg0: i32) -> (i32, i32, i32) {
    %c0_i32 = arith.constant 0 : i32
    %c0_i32_0 = arith.constant 0 : i32
    %c0_i32_1 = arith.constant 0 : i32
    return %arg0, %c0_i32, %c0_i32_0 : i32, i32, i32
  }
}

</mosaic_0001>

<bundles_post_ra>
// kernel: tpu_custom_call.1
= control target key start
LH: loop header
LB: loop body
LE: loop exit
PB: predicated region body
PF: predicated region fallthrough
CT: control target
= control target key end

     0   :  { %7 = vsyncpa [#allocation3], 0  ;;  %s214_s0 = inlined_call_operand.hbm [shape: f32[16,128], index: 0, kind: input, shape index: {}]   ;;  %s215_s1 = inlined_call_operand.hbm [shape: f32[16,128], index: 1, kind: input, shape index: {}]   ;;  %s216_s2 = inlined_call_operand.hbm [shape: f32[1,8,128], index: 2, kind: output, shape index: {}]  }
   0x1   :  { %8 = vsyncpa [#allocation6], 0 }
   0x2   :  { %9 = vsyncpa [#allocation4], 0  ;;  %s14_s11 = sshll.u32 %s214_s0, 4  ;;  %s185_s12 = smov [#allocation2]   ;;  %s15_s11 = int_to_ptr.hbm [resolvable:$true] %s14_s11 }
   0x3   :  { %s16_s13 = sshll.u32 %s185_s12, 4  ;;  %s27_s16 = sshll.u32 %s215_s1, 4  ;;  %s17_s13 = int_to_ptr.vmem [resolvable:$true] %s16_s13  ;;  %s28_s16 = int_to_ptr.hbm [resolvable:$true] %s27_s16 }
   0x4   :  { %s186_s17 = smov 128   ;;  %s187_s18 = smov 8  }
   0x5   :  { %22 = dma.hbm_to_vmem [thread:$0]  %s15_s11, 256, %s17_s13, [#allocation3], %s186_s17, %s186_s17, %s187_s18  }
   0x6   :  { %s188_s19 = smov [#allocation5]  }
   0x7   :  { %s29_s20 = sshll.u32 %s188_s19, 4  ;;  %s30_s20 = int_to_ptr.vmem [resolvable:$true] %s29_s20 }
   0x8   :  { %35 = dma.hbm_to_vmem [thread:$0]  %s28_s16, 256, %s30_s20, [#allocation6], %s186_s17, %s186_s17, %s187_s18  }
   0x9   :  { %179 = dma.done.wait [#allocation3], 256  }
   0xa   :  { %180 = vsyncadd [#allocation3], 4294967040 }
   0xb   :  { %181 = dma.done.wait [#allocation6], 256  }
   0xc   :  { %182 = vsyncadd [#allocation6], 4294967040  ;;  %v44_v0 = vld [vmem:[#allocation5] sm:$0xff]  ;;  %v45_v1 = vld [vmem:[#allocation5 + $0x8] sm:$0xff]  ;;  %s189_s0 = smov [#allocation7]   ;;  %s87_s23 = sshll.u32 %s216_s2, 4  ;;  %s88_s23 = int_to_ptr.hbm [resolvable:$true] %s87_s23 }
   0xd   :  { %v46_v2 = vld [vmem:[#allocation2] sm:$0xff]  ;;  %v47_v3 = vld [vmem:[#allocation2 + $0x8] sm:$0xff]  ;;  %s85_s1 = sshll.u32 %s189_s0, 4  ;;  %s86_s1 = int_to_ptr.vmem [resolvable:$true] %s85_s1 }
   0xe   :  { %v48_v4 = vsub.f32 %v44_v0, %v46_v2  ;;  %v49_v5 = vsub.f32 %v45_v1, %v47_v3 }
  0x10   :  { %v50_v6 = vmul.f32 %v48_v4, %v48_v4  ;;  %v51_v7 = vmul.f32 %v49_v5, %v49_v5 }
  0x12   :  { %v52_v8 = vadd.f32 1.0000001e-06, %v50_v6  ;;  %v53_v9 = vadd.f32 1.0000001e-06, %v51_v7 }
  0x14   :  { %103 = vrsqrt.f32 %v52_v8  ;;  %vm61_vm0 = vcmp.eq.f32.partialorder %v52_v8, inf  ;;  %v64_v21 = vand.u32 2147483648, %v52_v8  ;;  %vm63_vm1 = vcmp.eq.f32.partialorder %v52_v8, 0.0 }
  0x15   :  { %105 = vrsqrt.f32 %v53_v9  ;;  %vm73_vm2 = vcmp.eq.f32.partialorder %v53_v9, inf  ;;  %v76_v24 = vand.u32 2147483648, %v53_v9  ;;  %vm75_vm3 = vcmp.eq.f32.partialorder %v53_v9, 0.0 }
  0x1a   :  { %v104_v10 = vpop.eup %103 }
  0x1b   :  { %v106_v11 = vpop.eup %105  ;;  %v55_v12 = vmul.f32 %v104_v10, %v52_v8 }
  0x1c   :  { %v67_v13 = vmul.f32 %v106_v11, %v53_v9 }
  0x1d   :  { %v56_v14 = vmul.f32 %v104_v10, %v55_v12 }
  0x1e   :  { %v68_v15 = vmul.f32 %v106_v11, %v67_v13 }
  0x1f   :  { %v57_v16 = vmul.f32 0.5, %v56_v14 }
  0x20   :  { %v69_v17 = vmul.f32 0.5, %v68_v15 }
  0x21   :  { %v58_v18 = vsub.f32 1.5, %v57_v16 }
  0x22   :  { %v70_v19 = vsub.f32 1.5, %v69_v17 }
  0x23   :  { %v59_v20 = vmul.f32 %v104_v10, %v58_v18 }
  0x24   :  { %v71_v22 = vmul.f32 %v106_v11, %v70_v19 }
  0x25   :  { %v60_v23 = vmul.f32 %v59_v20, %v52_v8 }
  0x26   :  { %v72_v25 = vmul.f32 %v71_v22, %v53_v9 }
  0x27   :  { %v62_v26 = vsel %vm61_vm0, %v52_v8, %v60_v23 }
  0x28   :  { %v65_v27 = vsel %vm63_vm1, %v64_v21, %v62_v26  ;;  %v74_v28 = vsel %vm73_vm2, %v53_v9, %v72_v25 }
  0x29   :  { %v77_v29 = vsel %vm75_vm3, %v76_v24, %v74_v28 }
  0x2a   :  { %v78_v30 = vadd.f32 %v77_v29, %v65_v27 }
  0x2c   :  { %79 = vst [vmem:[#allocation7] sm:$0xff] %v78_v30 }
  0x2d   :  { %90 = dma.vmem_to_hbm [thread:$0]  %s86_s1, 128, %s88_s23, [#allocation4]  }
  0x2e   :  { %183 = dma.done.wait [#allocation4], 128  }
  0x2f   :  { %184 = vsyncadd [#allocation4], 4294967168 }
  0x30   :  { %95 = vsyncpa [#allocation3], 1 }
  0x31   :  { %96 = vsyncpa [#allocation6], 1 }
  0x32   :  { %97 = vsyncpa [#allocation4], 1 }

</bundles_post_ra>
